<compile_context>
chip_gen: v6e
topology: v6e:2x2x1
jax: 0.10.0
libtpu: 0.0.40
codegen_flags: <defaults>
</compile_context>

<pallas_src>
import functools

import jax
import jax.numpy as jnp
from jax import lax
from jax.experimental import pallas as pl
from jax.experimental.pallas import tpu as pltpu

_LANES = 128


def _metric_kernel(thr_ref, sig_ref, out_ref, *, num_thresholds, tile_rows,
                   sub_rows, edge_rows, compare_bf16):
    """Accumulate per-threshold, per-lane hit counts over one signal tile.

    thr_ref : SMEM (T,)               f32        score thresholds
    sig_ref : VMEM (tile_rows, 128)   f32/bf16   one DMA tile of signal scores
    out_ref : VMEM (T, 128)           int32      per-lane running counts
                                                 (constant block index -> resident
                                                  accumulator, written back once)
    """
    step = pl.program_id(0)
    nsteps = pl.num_programs(0)

    @pl.when(step == 0)
    def _():
        out_ref[...] = jnp.zeros_like(out_ref)

    num_sub = tile_rows // sub_rows                 # wrapper guarantees divisibility
    thrs = [thr_ref[t] for t in range(num_thresholds)]   # hoisted scalar reads
    # MXU row-sum LHS, hoisted once per grid step (not re-broadcast per chunk).
    ones = jnp.ones((8, sub_rows), jnp.float32)

    def accumulate(chunk, valid):
        # chunk: (sub_rows, 128) scores; valid: None or bool (sub_rows, 128).
        if valid is not None:
            # Rare path (at most one sub-chunk per kernel): keep it in f32 so
            # the int32-derived row mask and the hit mask share a layout.
            chunk = chunk.astype(jnp.float32)
        cols = []
        for t in range(num_thresholds):
            thr_t = thrs[t].astype(chunk.dtype)
            hits = chunk >= thr_t
            if valid is not None:
                # Mask the *hits*, not the data: exact for every threshold
                # (including -inf) and robust to NaN garbage in padded rows.
                hits = jnp.logical_and(hits, valid)
            # Row-sum on the otherwise idle MXU instead of a VPU add chain
            # (0/1 summands accumulate exactly in the f32 MXU accumulator).
            col = jnp.dot(ones, hits.astype(jnp.float32),
                          preferred_element_type=jnp.float32)[0:1, :]
            cols.append(col)
        # Single batched accumulator update per sub-chunk (no per-row RMWs).
        out_ref[...] += jnp.concatenate(cols, axis=0).astype(jnp.int32)

    def load(row0, nrows):
        chunk = sig_ref[pl.ds(row0, nrows), :]
        if not compare_bf16:
            chunk = chunk.astype(jnp.float32)       # bf16 upcast is in-register
        return chunk

    def full_block():
        @pl.loop(0, num_sub)
        def _(j):
            accumulate(load(pl.multiple_of(j * sub_rows, sub_rows), sub_rows),
                       None)

    if edge_rows == 0:
        # The grid tiles the rows exactly: no masking anywhere.
        full_block()
    else:
        is_edge = step == nsteps - 1

        @pl.when(jnp.logical_not(is_edge))
        def _():
            full_block()

        @pl.when(is_edge)
        def _():
            # Only the final ragged block pays for masking; sub-chunk bounds
            # vs. `edge_rows` are all static Python, so only the single
            # partially-valid sub-chunk builds a mask at all.
            for j in range(num_sub):
                lo = j * sub_rows
                if lo >= edge_rows:
                    break
                if lo + sub_rows <= edge_rows:
                    accumulate(load(lo, sub_rows), None)
                else:
                    nvalid = edge_rows - lo          # static
                    ridx = lax.broadcasted_iota(
                        jnp.int32, (sub_rows, _LANES), 0)
                    accumulate(load(lo, sub_rows), ridx < nvalid)


def _pallas_lane_counts(sig2d, thr_f32, *, tile_rows, sub_rows, edge_rows,
                        compare_bf16):
    rows = int(sig2d.shape[0])
    num_t = int(thr_f32.shape[0])
    grid = (pl.cdiv(rows, tile_rows),)

    kernel = functools.partial(
        _metric_kernel,
        num_thresholds=num_t,
        tile_rows=tile_rows,
        sub_rows=sub_rows,
        edge_rows=edge_rows,
        compare_bf16=compare_bf16,
    )

    return pl.pallas_call(
        kernel,
        out_shape=jax.ShapeDtypeStruct((num_t, _LANES), jnp.int32),
        grid_spec=pltpu.PrefetchScalarGridSpec(
            num_scalar_prefetch=0,
            grid=grid,
            in_specs=[
                pl.BlockSpec(memory_space=pltpu.MemorySpace.SMEM),    # thresholds
                pl.BlockSpec((tile_rows, _LANES), lambda i: (i, 0)),  # signal tiles
            ],
            # Lane-dense (T, 128) int32 output block, resident across the whole
            # reduction axis; the cross-lane sum happens in the wrapper.
            out_specs=pl.BlockSpec((num_t, _LANES), lambda i: (0, 0)),
        ),
        compiler_params=pltpu.CompilerParams(
            dimension_semantics=("arbitrary",),
        ),
    )(thr_f32, sig2d)


@functools.partial(
    jax.jit,
    static_argnames=("max_tile_rows", "sub_rows", "native_bf16_compare"))
def _recall_at_thresholds(signals, thresholds, *, max_tile_rows=8192,
                          sub_rows=512, native_bf16_compare=False):
    """values[t] = fraction of `signals` >= thresholds[t], computed on TPU."""
    flat = signals.reshape(-1)
    if flat.dtype not in (jnp.float32, jnp.bfloat16):
        flat = flat.astype(jnp.float32)
    thr_f32 = thresholds.astype(jnp.float32)

    n = int(flat.shape[0])
    num_t = int(thr_f32.shape[0])
    rem = n % _LANES
    n_main = n - rem
    rows = n_main // _LANES

    # Native bf16 compares only when they are exact (flag set by the caller
    # after verifying every threshold is bf16-representable).
    compare_bf16 = bool(native_bf16_compare) and flat.dtype == jnp.bfloat16

    counts = jnp.zeros((num_t,), jnp.int32)

    if rows > 0:
        # Aligned case: the reshape is a bitcast under jit (no copy).
        # TODO(synk): for rem != 0 this prefix slice is one extra on-device
        # pass over the bulk (see rank-1 BlockSpec TODO at the top of file).
        bulk = flat if rem == 0 else flat[:n_main]
        sig2d = bulk.reshape(rows, _LANES)

        # ---- static tile sizing ------------------------------------------
        min_sub = 16 if sig2d.dtype == jnp.bfloat16 else 8
        sub = max(min_sub, (min(sub_rows, max_tile_rows) // min_sub) * min_sub)
        if rows <= sub:
            tile = rows                 # single full-extent block (always legal)
            sub = rows
        else:
            tile = (min(max_tile_rows, rows) // sub) * sub   # multiple of `sub`
        edge_rows = rows % tile         # >0 only when the grid over-covers rows

        lane_counts = _pallas_lane_counts(
            sig2d, thr_f32, tile_rows=tile, sub_rows=sub,
            edge_rows=edge_rows, compare_bf16=compare_bf16)
        counts = counts + jnp.sum(lane_counts, axis=1)

    if rem > 0:
        # <128-element ragged tail: trivially cheap in plain XLA; keeping it
        # out of the kernel removes any padding-sentinel caveats.
        tail = flat[n_main:].astype(jnp.float32)
        counts = counts + jnp.sum(
            (tail[None, :] >= thr_f32[:, None]).astype(jnp.int32), axis=1)

    return counts.astype(jnp.float32) / jnp.float32(max(n, 1))


class Metric:
    """JAX/Pallas port of the PyTorch `Metric` module."""

    name = "signal_recall"
    param = "threshold"

    def __init__(self, thresholds) -> None:
        self.thresholds = list(thresholds)
        self.values = [0.0 for _ in thresholds]
        self._thr_arr = jnp.asarray(self.thresholds, jnp.float32)
        # Enable native bf16 compares only when they are exact, i.e. every
        # threshold is exactly representable in bf16 (preserves f32 semantics).
        self._bf16_exact = all(
            float(jnp.bfloat16(float(t))) == float(t) for t in self.thresholds)

    def update(self, metrics):
        try:
            metric = metrics[self.name]
        except KeyError:
            metric = {}
            metrics[self.name] = metric
        for threshold, value in zip(self.thresholds, self.values):
            try:
                metric[threshold].append(value)
            except KeyError:
                metric[threshold] = [value]

    def call(self, backgrounds, glitches, signals):
        # TODO(synk): base Metric.call is abstract (NotImplementedError) in the
        # reference; we implement the canonical concrete child-class metric
        # (recall of signal scores at fixed thresholds). backgrounds/glitches
        # are accepted for signature fidelity but unused by this metric.
        return _recall_at_thresholds(signals, self._thr_arr,
                                     native_bf16_compare=self._bf16_exact)

    def forward(self, backgrounds, glitches, signals):
        values = self.call(backgrounds, glitches, signals)
        self.values = [float(v) for v in jax.device_get(values)]
        return values

    __call__ = forward

    def __str__(self):
        tab = " " * 8
        string = ""
        for threshold, value in zip(self.thresholds, self.values):
            string += f"\n{tab}{self.param} = {threshold}: {value:0.4f}"
        return self.name + " @:" + string

    def __getitem__(self, threshold):
        try:
            idx = self.thresholds.index(threshold)
        except ValueError:
            raise KeyError(str(threshold))
        return self.values[idx]

    def __contains__(self, threshold):
        return threshold in self.thresholds


if __name__ == "__main__":
    key = jax.random.PRNGKey(0)
    kb, kg, ks = jax.random.split(key, 3)

    n = 4096
    backgrounds = jax.random.normal(kb, (n,), jnp.float32)      # unused by metric
    glitches = jax.random.normal(kg, (n,), jnp.float32) * 2.0   # unused by metric
    signals = jax.random.normal(ks, (n,), jnp.float32) + 1.0    # signal scores

    thresholds = [0.0, 0.5, 1.0, 1.5]
    thr_arr = jnp.asarray(thresholds, jnp.float32)
    metric = Metric(thresholds)

    # 1) module-level path: 128-aligned f32 input, single-pass kernel
    values = metric(backgrounds, glitches, signals)
    values = jax.block_until_ready(values)
    ref = jnp.stack(
        [jnp.mean((signals >= t).astype(jnp.float32)) for t in thresholds])
    assert jnp.allclose(values, ref, atol=1e-6), (values, ref)

    # 2) ragged length + multi-tile grid + edge-gated row masking + jnp tail
    #    (tiny forced tile size just to exercise the multi-step / edge paths)
    sig2 = jax.random.normal(jax.random.PRNGKey(1), (5000,), jnp.float32)
    v2 = jax.block_until_ready(
        _recall_at_thresholds(sig2, thr_arr, max_tile_rows=16))
    ref2 = jnp.stack(
        [jnp.mean((sig2 >= t).astype(jnp.float32)) for t in thresholds])
    assert jnp.allclose(v2, ref2, atol=1e-6), (v2, ref2)

    # 3) bf16 input streamed as bf16 and compared natively in bf16 (thresholds
    #    are bf16-exact, so the result matches the f32 reference exactly)
    sig3 = jax.random.normal(jax.random.PRNGKey(2), (4096,),
                             jnp.float32).astype(jnp.bfloat16)
    v3 = jax.block_until_ready(
        _recall_at_thresholds(sig3, thr_arr, native_bf16_compare=True))
    ref3 = jnp.stack(
        [jnp.mean((sig3.astype(jnp.float32) >= t).astype(jnp.float32))
         for t in thresholds])
    assert jnp.allclose(v3, ref3, atol=1e-6), (v3, ref3)

    print("KERNEL_OK")
</pallas_src>

<mosaic_0001>
module attributes {stable_mosaic.version = 11 : i64} {
  func.func @_metric_kernel(%arg0: i32, %arg1: memref<4xf32, #tpu.memory_space<smem>>, %arg2: memref<32x128xf32, #tpu.memory_space<vmem>>, %arg3: memref<4x128xi32, #tpu.memory_space<vmem>>) attributes {dimension_semantics = [#tpu.dimension_semantics<arbitrary>], iteration_bounds = array<i64: 1>, scalar_prefetch = 0 : i64, scratch_operands = 0 : i64, tpu.core_type = #tpu.core_type<tc>, window_params = [{transform_indices = @transform_0, window_bounds = array<i64: 4>}, {transform_indices = @transform_1, window_bounds = array<i64: 32, 128>}, {pipeline_mode = #tpu.pipeline_mode<synchronous>, transform_indices = @transform_2, window_bounds = array<i64: 4, 128>}]} {
    %c0_i32 = arith.constant 0 : i32
    %0 = arith.cmpi eq, %arg0, %c0_i32 : i32
    %1 = arith.extui %0 : i1 to i32
    %c0_i32_0 = arith.constant 0 : i32
    %2 = arith.cmpi ne, %1, %c0_i32_0 : i32
    scf.if %2 {
      %c0_i32_13 = arith.constant 0 : i32
      %43 = vector.broadcast %c0_i32_13 : i32 to vector<4x128xi32>
      %c0_14 = arith.constant 0 : index
      %c0_15 = arith.constant 0 : index
      %44 = vector.load %arg3[%c0_14, %c0_15] : memref<4x128xi32, #tpu.memory_space<vmem>>, vector<4x128xi32>
      tpu.vector_store %arg3[%c0_14, %c0_15], %43 {strides = array<i32>} : memref<4x128xi32, #tpu.memory_space<vmem>>, vector<4x128xi32>,
    } else {
    }
    %c0 = arith.constant 0 : index
    %3 = memref.load %arg1[%c0] : memref<4xf32, #tpu.memory_space<smem>>
    %c1 = arith.constant 1 : index
    %4 = memref.load %arg1[%c1] : memref<4xf32, #tpu.memory_space<smem>>
    %c2 = arith.constant 2 : index
    %5 = memref.load %arg1[%c2] : memref<4xf32, #tpu.memory_space<smem>>
    %c3 = arith.constant 3 : index
    %6 = memref.load %arg1[%c3] : memref<4xf32, #tpu.memory_space<smem>>
    %cst = arith.constant 1.000000e+00 : f32
    %7 = vector.broadcast %cst : f32 to vector<8x32xf32>
    %c0_i32_1 = arith.constant 0 : i32
    %c1_i32 = arith.constant 1 : i32
    %8 = arith.muli %c0_i32_1, %c1_i32 : i32
    %c0_i32_2 = arith.constant 0 : i32
    %9 = arith.addi %c0_i32_2, %8 : i32
    %c32_i32 = arith.constant 32 : i32
    %10 = arith.muli %9, %c32_i32 : i32
    %11 = tpu.assume_multiple %10, 32 : i32
    %12 = arith.index_cast %11 : i32 to index
    %c0_3 = arith.constant 0 : index
    %13 = vector.load %arg2[%12, %c0_3] : memref<32x128xf32, #tpu.memory_space<vmem>>, vector<32x128xf32>
    %14 = vector.broadcast %3 : f32 to vector<32x128xf32>
    %15 = arith.cmpf oge, %13, %14 : vector<32x128xf32>
    %16 = arith.extui %15 : vector<32x128xi1> to vector<32x128xi32>
    %17 = arith.sitofp %16 : vector<32x128xi32> to vector<32x128xf32>
    %cst_4 = arith.constant dense<0.000000e+00> : vector<8x128xf32>
    %18 = tpu.matmul %7, %17, %cst_4 {dimension_numbers = #tpu.dot_dimension_numbers<[1], [0], [0], [1], [0, 0, 1, 1], [], []>} : vector<8x32xf32>, vector<32x128xf32>, vector<8x128xf32> -> vector<8x128xf32>
    %19 = vector.extract_strided_slice %18 {offsets = [0, 0], sizes = [1, 128], strides = [1, 1]} : vector<8x128xf32> to vector<1x128xf32>
    %20 = vector.broadcast %4 : f32 to vector<32x128xf32>
    %21 = arith.cmpf oge, %13, %20 : vector<32x128xf32>
    %22 = arith.extui %21 : vector<32x128xi1> to vector<32x128xi32>
    %23 = arith.sitofp %22 : vector<32x128xi32> to vector<32x128xf32>
    %cst_5 = arith.constant dense<0.000000e+00> : vector<8x128xf32>
    %24 = tpu.matmul %7, %23, %cst_5 {dimension_numbers = #tpu.dot_dimension_numbers<[1], [0], [0], [1], [0, 0, 1, 1], [], []>} : vector<8x32xf32>, vector<32x128xf32>, vector<8x128xf32> -> vector<8x128xf32>
    %25 = vector.extract_strided_slice %24 {offsets = [0, 0], sizes = [1, 128], strides = [1, 1]} : vector<8x128xf32> to vector<1x128xf32>
    %26 = vector.broadcast %5 : f32 to vector<32x128xf32>
    %27 = arith.cmpf oge, %13, %26 : vector<32x128xf32>
    %28 = arith.extui %27 : vector<32x128xi1> to vector<32x128xi32>
    %29 = arith.sitofp %28 : vector<32x128xi32> to vector<32x128xf32>
    %cst_6 = arith.constant dense<0.000000e+00> : vector<8x128xf32>
    %30 = tpu.matmul %7, %29, %cst_6 {dimension_numbers = #tpu.dot_dimension_numbers<[1], [0], [0], [1], [0, 0, 1, 1], [], []>} : vector<8x32xf32>, vector<32x128xf32>, vector<8x128xf32> -> vector<8x128xf32>
    %31 = vector.extract_strided_slice %30 {offsets = [0, 0], sizes = [1, 128], strides = [1, 1]} : vector<8x128xf32> to vector<1x128xf32>
    %32 = vector.broadcast %6 : f32 to vector<32x128xf32>
    %33 = arith.cmpf oge, %13, %32 : vector<32x128xf32>
    %34 = arith.extui %33 : vector<32x128xi1> to vector<32x128xi32>
    %35 = arith.sitofp %34 : vector<32x128xi32> to vector<32x128xf32>
    %cst_7 = arith.constant dense<0.000000e+00> : vector<8x128xf32>
    %36 = tpu.matmul %7, %35, %cst_7 {dimension_numbers = #tpu.dot_dimension_numbers<[1], [0], [0], [1], [0, 0, 1, 1], [], []>} : vector<8x32xf32>, vector<32x128xf32>, vector<8x128xf32> -> vector<8x128xf32>
    %37 = vector.extract_strided_slice %36 {offsets = [0, 0], sizes = [1, 128], strides = [1, 1]} : vector<8x128xf32> to vector<1x128xf32>
    %c0_8 = arith.constant 0 : index
    %c0_9 = arith.constant 0 : index
    %38 = vector.load %arg3[%c0_8, %c0_9] : memref<4x128xi32, #tpu.memory_space<vmem>>, vector<4x128xi32>
    %39 = tpu.concatenate %19, %25, %31, %37 in 0 : vector<1x128xf32>, vector<1x128xf32>, vector<1x128xf32>, vector<1x128xf32> -> vector<4x128xf32>
    %40 = arith.fptosi %39 : vector<4x128xf32> to vector<4x128xi32>
    %41 = arith.addi %38, %40 : vector<4x128xi32>
    %c0_10 = arith.constant 0 : index
    %c0_11 = arith.constant 0 : index
    %42 = vector.load %arg3[%c0_10, %c0_11] : memref<4x128xi32, #tpu.memory_space<vmem>>, vector<4x128xi32>
    tpu.vector_store %arg3[%c0_10, %c0_11], %41 {strides = array<i32>} : memref<4x128xi32, #tpu.memory_space<vmem>>, vector<4x128xi32>,
    %c1_i32_12 = arith.constant 1 : i32
    return
  }
  func.func @transform_0(%arg0: i32) -> i32 {
    %c0_i32 = arith.constant 0 : i32
    %c0_i32_0 = arith.constant 0 : i32
    return %c0_i32 : i32
  }
  func.func @transform_1(%arg0: i32) -> (i32, i32) {
    %c0_i32 = arith.constant 0 : i32
    %c0_i32_0 = arith.constant 0 : i32
    return %arg0, %c0_i32 : i32, i32
  }
  func.func @transform_2(%arg0: i32) -> (i32, i32) {
    %c0_i32 = arith.constant 0 : i32
    %c0_i32_0 = arith.constant 0 : i32
    %c0_i32_1 = arith.constant 0 : i32
    return %c0_i32, %c0_i32_0 : i32, i32
  }
}

</mosaic_0001>

<bundles_post_ra>
// kernel: _recall_at_thresholds.1
= control target key start
LH: loop header
LB: loop body
LE: loop exit
PB: predicated region body
PF: predicated region fallthrough
CT: control target
= control target key end

     0   :  { %7 = vsyncpa [#allocation4], 0  ;;  %s627_s0 = inlined_call_operand.vmem [shape: f32[4], index: 0, kind: input, shape index: {}]   ;;  %s628_s1 = inlined_call_operand.hbm [shape: f32[32,128], index: 1, kind: input, shape index: {}]   ;;  %s629_s2 = inlined_call_operand.vmem [shape: s32[4,128], index: 2, kind: output, shape index: {}]  }
   0x1   :  { %s15_s11 = sshll.u32 %s627_s0, 4  ;;  %s16_s11 = int_to_ptr.vmem [resolvable:$true] %s15_s11 }
   0x2   :  { %8 = vsyncpa [#allocation3], 0  ;;  %s525_s12 = scalar_lea.vmem %s16_s11, 16  ;;  %p530_p1 = scmp.lt.s32.totalorder %s16_s11, %s16_s11 }
   0x3   :  { %p526_p0 = scmp.ne.s32.totalorder %s16_s11, %s525_s12  ;;  %p531_p2 = scmp.lt.s32.totalorder %s525_s12, %s525_s12 }
   0x5   :  { %p532_p3 = por %p531_p2, %p530_p1 }
   0x7   :  { %p533_p4 = pnand %p532_p3, %p526_p0 }
   0x9   :  { %536 = shalt.err (!%p533_p4)
}
   0xa   :  { %s561_s13 = smov [#allocation2]   ;;  %s562_s14 = smov [#allocation5]  }
   0xb   :  { %18 = dma.vmem_to_smem %s16_s11, 16, %s561_s13, [#allocation4]  }
   0xc   :  { %s24_s15 = sshll.u32 %s562_s14, 4  ;;  %s25_s15 = int_to_ptr.vmem [resolvable:$true] %s24_s15 }
   0xd   :  { %s545_s16 = scalar_lea.vmem %s25_s15, 512  ;;  %p550_p6 = scmp.lt.s32.totalorder %s25_s15, %s25_s15 }
   0xe   :  { %p546_p5 = scmp.ne.s32.totalorder %s25_s15, %s545_s16  ;;  %p551_p7 = scmp.lt.s32.totalorder %s545_s16, %s545_s16 }
  0x10   :  { %p552_p8 = por %p551_p7, %p550_p6 }
  0x12   :  { %p553_p9 = pnand %p552_p8, %p546_p5 }
  0x14   :  { %556 = shalt.err (!%p553_p9)
}
  0x15   :  { %s563_s0 = smov 128   ;;  %s564_s17 = smov 8  }
  0x16   :  { %30 = dma.hbm_to_vmem [thread:$0]  %s628_s1, 512, %s25_s15, [#allocation3], %s563_s0, %s563_s0, %s564_s17  }
  0x17   :  { %557 = dma.done.wait [#allocation4], 16  }
  0x18   :  { %558 = vsyncadd [#allocation4], 4294967280 }
  0x19   :  { %559 = dma.done.wait [#allocation3], 512  }
  0x1a   :  { %560 = vsyncadd [#allocation3], 4294966784 }
  0x1b   :  { %37 = sfence }
  0x1c   :  { %s43_s20 = sld [smem:[#allocation2]]  ;;  %v565_v0 = vmov 0.0   ;;  %vm566_vm0 = vmmov 0   ;;  %v50_v1 = vld [vmem:[#allocation5 + $0x18] sm:$0xff]  ;;  %v49_v2 = vld [vmem:[#allocation5 + $0x10] sm:$0xff]  ;;  %v48_v4 = vld [vmem:[#allocation5 + $0x8] sm:$0xff] }
  0x1d   :  { %471 = vmatprep.subr.mxu0 %v565_v0  ;;  %482 = vmatprep.subr.mxu1 %v565_v0  ;;  %s412_s21 = sld [smem:[#allocation2 + $0x1]]  ;;  %v567_v6 = vmov 1.0   ;;  %v47_v7 = vld [vmem:[#allocation5] sm:$0xff]  ;;  %vm64_vm9 = vcmask 261120   ;;  %v568_v10 = vmov 0  }
  0x1e   :  { %479 = vmatprep.mubr.msk.f32.mxu0 %vm566_vm0, %v565_v0  ;;  %490 = vmatprep.mubr.msk.f32.mxu1 %vm566_vm0, %v565_v0  ;;  %s413_s1 = sld [smem:[#allocation2 + $0x2]]  ;;  %42 = vst [vmem:[%s629_s2] sm:$0xf] %v568_v10 }
  0x1f   :  { %s414_s22 = sld [smem:[#allocation2 + $0x3]] }
  0x22   :  { %v51_v3 = vstv %s43_s20 }
  0x23   :  { %vm55_vm1 = vcmp.ge.f32.partialorder %v50_v1, %v51_v3  ;;  %v138_v5 = vstv %s412_s21  ;;  %vm54_vm2 = vcmp.ge.f32.partialorder %v49_v2, %v51_v3  ;;  %vm53_vm5 = vcmp.ge.f32.partialorder %v48_v4, %v51_v3 }
  0x24   :  { %472 = vmatpush3.msk.msra.mxu0 %vm55_vm1, %v567_v6  ;;  %vm142_vm3 = vcmp.ge.f32.partialorder %v50_v1, %v138_v5  ;;  %vm141_vm4 = vcmp.ge.f32.partialorder %v49_v2, %v138_v5  ;;  %vm140_vm6 = vcmp.ge.f32.partialorder %v48_v4, %v138_v5  ;;  %vm52_vm7 = vcmp.ge.f32.partialorder %v47_v7, %v51_v3 }
  0x25   :  { %483 = vmatpush3.msk.msra.mxu1 %vm142_vm3, %v567_v6  ;;  %473 = vmatprep.subr.mxu0 %v565_v0  ;;  %v221_v8 = vstv %s413_s1  ;;  %vm139_vm8 = vcmp.ge.f32.partialorder %v47_v7, %v138_v5  ;;  %v304_v9 = vstv %s414_s22  ;;  %vm397_vm3 = vcmask 1040384   ;;  %v387_v26 = vld [vmem:[%s629_s2] sm:$0xf] }
  0x26   :  { %484 = vmatprep.subr.mxu1 %v565_v0  ;;  %474 = vmatpush3.msk.msra.mxu0 %vm54_vm2, %v567_v6  ;;  %vm225_vm10 = vcmp.ge.f32.partialorder %v50_v1, %v221_v8  ;;  %vm308_vm11 = vcmp.ge.f32.partialorder %v50_v1, %v304_v9  ;;  %vm224_vm12 = vcmp.ge.f32.partialorder %v49_v2, %v221_v8 }
  0x27   :  { %485 = vmatpush3.msk.msra.mxu1 %vm141_vm4, %v567_v6  ;;  %475 = vmatprep.subr.mxu0 %v565_v0  ;;  %vm307_vm13 = vcmp.ge.f32.partialorder %v49_v2, %v304_v9  ;;  %vm223_vm14 = vcmp.ge.f32.partialorder %v48_v4, %v221_v8  ;;  %vm306_vm15 = vcmp.ge.f32.partialorder %v48_v4, %v304_v9  ;;  %vm399_vm4 = vcmask 1041408  }
  0x28   :  { %486 = vmatprep.subr.mxu1 %v565_v0  ;;  %476 = vmatpush3.msk.msra.mxu0 %vm53_vm5, %v567_v6  ;;  %vm222_vm1 = vcmp.ge.f32.partialorder %v47_v7, %v221_v8  ;;  %vm305_vm2 = vcmp.ge.f32.partialorder %v47_v7, %v304_v9 }
  0x29   :  { %487 = vmatpush3.msk.msra.mxu1 %vm140_vm6, %v567_v6  ;;  %477 = vmatprep.subr.mxu0 %v565_v0 }
  0x2a   :  { %488 = vmatprep.subr.mxu1 %v565_v0  ;;  %478 = vmatpush3.msk.msra.mxu0 %vm52_vm7, %v567_v6 }
  0x2b   :  { %489 = vmatpush3.msk.msra.mxu1 %vm139_vm8, %v567_v6  ;;  %480 = vmatmul.mubr.msk.f32.vlgmr.msra.gmra.mxu0 %vm64_vm9, %v567_v6 }
  0x2c   :  { %491 = vmatmul.mubr.msk.f32.vlgmr.msra.gmra.mxu1 %vm64_vm9, %v567_v6  ;;  %493 = vmatprep.subr.mxu0 %v565_v0 }
  0x2d   :  { %504 = vmatprep.subr.mxu1 %v565_v0  ;;  %494 = vmatpush3.msk.msra.mxu0 %vm225_vm10, %v567_v6 }
  0x2e   :  { %505 = vmatpush3.msk.msra.mxu1 %vm308_vm11, %v567_v6  ;;  %495 = vmatprep.subr.mxu0 %v565_v0 }
  0x2f   :  { %506 = vmatprep.subr.mxu1 %v565_v0  ;;  %496 = vmatpush3.msk.msra.mxu0 %vm224_vm12, %v567_v6 }
  0x30   :  { %507 = vmatpush3.msk.msra.mxu1 %vm307_vm13, %v567_v6  ;;  %497 = vmatprep.subr.mxu0 %v565_v0 }
  0x31   :  { %508 = vmatprep.subr.mxu1 %v565_v0  ;;  %498 = vmatpush3.msk.msra.mxu0 %vm223_vm14, %v567_v6 }
  0x32   :  { %509 = vmatpush3.msk.msra.mxu1 %vm306_vm15, %v567_v6  ;;  %499 = vmatprep.subr.mxu0 %v565_v0 }
  0x33   :  { %510 = vmatprep.subr.mxu1 %v565_v0  ;;  %500 = vmatpush3.msk.msra.mxu0 %vm222_vm1, %v567_v6 }
  0x34   :  { %501 = vmatprep.mubr.msk.f32.mxu0 %vm566_vm0, %v565_v0  ;;  %511 = vmatpush3.msk.msra.mxu1 %vm305_vm2, %v567_v6 }
  0x35   :  { %512 = vmatprep.mubr.msk.f32.mxu1 %vm566_vm0, %v565_v0  ;;  %502 = vmatmul.mubr.msk.f32.vlgmr.msra.gmra.mxu0 %vm64_vm9, %v567_v6  ;;  %vm401_vm0 = vcmask 1042432  }
  0x36   :  { %513 = vmatmul.mubr.msk.f32.vlgmr.msra.gmra.mxu1 %vm64_vm9, %v567_v6 }
  0xeb   :  { %v134_v11 = vpop.f32.mrf.mxu0 }
  0xec   :  { %v217_v12 = vpop.f32.mrf.mxu1 }
  0xed   :  { %v481_v13 = vpop.f32.mrf.mxu0  ;;  %v389_v15 = vrot.slane %v217_v12, 7 }
  0xee   :  { %v492_v14 = vpop.f32.mrf.mxu1 }
  0xef   :  { %v398_v19 = vsel %vm397_vm3, %v134_v11, %v389_v15 }
  0xf5   :  { %v300_v16 = vpop.f32.mrf.mxu0 }
  0xf6   :  { %v392_v17 = vrot.slane %v300_v16, 6  ;;  %v383_v18 = vpop.f32.mrf.mxu1 }
  0xf7   :  { %v395_v20 = vrot.slane %v383_v18, 5  ;;  %v503_v21 = vpop.f32.mrf.mxu0 }
  0xf8   :  { %v400_v22 = vsel %vm399_vm4, %v398_v19, %v392_v17  ;;  %v514_v23 = vpop.f32.mrf.mxu1 }
  0xf9   :  { %v402_v24 = vsel %vm401_vm0, %v400_v22, %v395_v20 }
  0xfa   :  { %v515_v25 = vtrunc.f32 %v402_v24 }
  0xfc   :  { %v516_v27 = vcvt.f32.s32 %v515_v25 }
  0xfe   :  { %v404_v28 = vadd.s32 %v516_v27, %v387_v26 }
 0x100   :  { %405 = vst [vmem:[%s629_s2] sm:$0xf] %v404_v28 }
 0x101   :  { %410 = vsyncpa [#allocation3], 1 }
 0x102   :  { %411 = vsyncpa [#allocation4], 1 }

</bundles_post_ra>
